<compile_context>
chip_gen: v5e
topology: v5e:2x2
jax: 0.10.0
libtpu: 0.0.40
codegen_flags: <defaults>
</compile_context>

<pallas_src>
import functools
import math

import jax
import jax.numpy as jnp
from jax import lax
from jax.experimental import pallas as pl
from jax.experimental.pallas import tpu as pltpu


def _round_up(x, m):
    return (x + m - 1) // m * m


_ONEHOT_VOCAB_MAX = 8192        # one-hot MXU path vocab cap (wasted MACs stay ~us/block)
_GATHER_SEMS = 32               # concurrent row DMAs in the HBM gather ring
_MAX_TOKENS_PER_CALL = 32768    # cap on ids scalar-prefetched into SMEM per call


def _vmem_budgets():
    """Generation-aware scoped-VMEM limit and kernel working-set budget (per TC)."""
    try:
        cap = int(pltpu.get_tpu_info().vmem_capacity_bytes)
    except Exception:
        cap = 64 * 1024 * 1024          # conservative fallback: v7x per-TC VMEM
    # Request up to 3/4 of physical VMEM from the compiler (96 MiB on v5e/v6e's
    # 128 MiB, 48 MiB on v7x's 64 MiB per TensorCore) and size our own tiles
    # against a budget that leaves pipeline / compiler headroom below that.
    vmem_limit = min((cap * 3) // 4, 96 * 1024 * 1024)
    budget = (vmem_limit * 3) // 4
    return budget, vmem_limit


# ---------------------------------------------------------------------------
# Path A — small table: one-hot matmul on the MXU, table resident in VMEM.
# ---------------------------------------------------------------------------
def _onehot_matmul_kernel(ids_ref, emb_ref, out_ref, *, scale, precision):
    # ids_ref: (TOK_BLOCK, 1) int32   (VMEM)
    # emb_ref: (V, D_pad)             (VMEM, whole table, resident across grid)
    # out_ref: (TOK_BLOCK, D_pad)     (VMEM, lane-dense since D_pad % 128 == 0)
    ids = ids_ref[...]                                         # (T, 1)
    vocab = emb_ref.shape[0]
    col = lax.broadcasted_iota(jnp.int32, (ids.shape[0], vocab), 1)
    onehot = (ids == col).astype(emb_ref.dtype)                # (T, V)
    acc = jnp.dot(
        onehot,
        emb_ref[...],
        precision=precision,
        preferred_element_type=jnp.float32,
    )                                                          # (T, D_pad) f32
    out_ref[...] = (acc * scale).astype(out_ref.dtype)


def _onehot_vmem_est(tok_block, vocab, d_pad, dsize):
    tbl = vocab * d_pad * dsize                       # single-buffered resident table
    out = 2 * tok_block * d_pad * dsize               # double-buffered output tile
    ids = 2 * tok_block * 4
    onehot = tok_block * _round_up(vocab, 128) * dsize
    acc = tok_block * d_pad * 4                       # f32 accumulator temp
    return tbl + out + ids + onehot + acc


def _embeddings_small_vocab(flat_ids, emb_table, scale, budget, vmem_limit):
    n_tok = flat_ids.shape[0]
    vocab, d_model = emb_table.shape
    dsize = jnp.dtype(emb_table.dtype).itemsize

    # Lane-dense output: pad the feature dim to a multiple of 128 so the kernel
    # writes full unmasked vector stores; the pad is sliced off afterwards.
    d_pad = _round_up(d_model, 128)
    if d_pad != d_model:
        emb_table = jnp.pad(emb_table, ((0, 0), (0, d_pad - d_model)))

    # Token block: big enough to amortize grid-step overhead, small enough that
    # tiles + the resident table fit the per-generation working-set budget.
    tok_block = min(512, _round_up(n_tok, 8))
    while tok_block > 8 and _onehot_vmem_est(tok_block, vocab, d_pad, dsize) > budget:
        tok_block = max(8, _round_up(tok_block // 2, 8))

    n_pad = _round_up(n_tok, tok_block)
    if n_pad != n_tok:
        flat_ids = jnp.pad(flat_ids, (0, n_pad - n_tok))
    ids2d = flat_ids.reshape(n_pad, 1)

    # bf16 x bf16 one-hot selection with f32 accumulation is already exact in a
    # single MXU pass; only f32 tables need HIGHEST (multi-pass) to stay exact.
    precision = (lax.Precision.HIGHEST if emb_table.dtype == jnp.float32
                 else lax.Precision.DEFAULT)

    def _build(table_spec):
        return pl.pallas_call(
            functools.partial(_onehot_matmul_kernel, scale=scale, precision=precision),
            out_shape=jax.ShapeDtypeStruct((n_pad, d_pad), emb_table.dtype),
            grid=(n_pad // tok_block,),
            in_specs=[
                pl.BlockSpec((tok_block, 1), lambda i: (i, 0)),
                table_spec,
            ],
            out_specs=pl.BlockSpec((tok_block, d_pad), lambda i: (i, 0)),
            compiler_params=pltpu.CompilerParams(
                dimension_semantics=("parallel",),
                vmem_limit_bytes=vmem_limit,
            ),
        )

    # The table never changes across grid steps, so a single VMEM buffer halves
    # its footprint (matters most on v7x's 64 MiB per-TC VMEM). Fall back to the
    # default double-buffered spec if single-buffer pipeline_mode is rejected.
    try:
        out = _build(pl.BlockSpec((vocab, d_pad), lambda i: (0, 0),
                                  pipeline_mode=pl.Buffered(1)))(ids2d, emb_table)
    except Exception:
        out = _build(pl.BlockSpec((vocab, d_pad), lambda i: (0, 0)))(ids2d, emb_table)

    return out[:n_tok, :d_model]


# ---------------------------------------------------------------------------
# Path B — large table: per-row DMA gather with a deep ring of in-flight DMAs;
# table stays in HBM, ids scalar-prefetched into SMEM (chunked in the wrapper).
# ---------------------------------------------------------------------------
def _dma_gather_kernel(ids_ref, emb_hbm, out_ref, sem, *,
                       tok_block, nsem, n_valid, scale):
    # ids_ref: (n_pad,) int32 in SMEM (scalar prefetch)
    # emb_hbm: (V, D) embedding table ref left in HBM (memory_space=pl.ANY)
    # out_ref: (tok_block, D) output tile in VMEM
    # sem    : ring of `nsem` DMA semaphores
    blk = pl.program_id(0)
    base = blk * tok_block

    def start_row(r, slot):
        # Padded tail rows issue no DMA at all.
        @pl.when(base + r < n_valid)
        def _():
            tok = ids_ref[base + r]
            pltpu.make_async_copy(
                emb_hbm.at[pl.ds(tok, 1), :],
                out_ref.at[pl.ds(r, 1), :],
                sem.at[slot],
            ).start()

    def wait_row(r, slot):
        @pl.when(base + r < n_valid)
        def _():
            pltpu.make_async_copy(
                emb_hbm.at[pl.ds(0, 1), :],      # same shape/dtype as started copy
                out_ref.at[pl.ds(r, 1), :],
                sem.at[slot],
            ).wait()

    # Prime the ring: up to `nsem` row gathers in flight (tok_block >= nsem).
    for r in range(nsem):
        start_row(r, r)

    # Steady state: groups of `nsem` rows; the inner range is statically
    # unrolled so the scheduler can co-issue SMEM id loads, descriptor builds
    # and semaphore waits across rows. The next row's DMA (and its SMEM read)
    # is issued BEFORE waiting on the current one, keeping the ring full and
    # the id load ahead of any .wait().
    n_groups = tok_block // nsem

    @pl.loop(0, n_groups)
    def _(g):
        for j in range(nsem):
            r = g * nsem + j

            @pl.when(r + nsem < tok_block)
            def _(r=r, j=j):
                start_row(r + nsem, j)

            wait_row(r, j)

    # sqrt(d_model) scaling in f32, then cast back to the table dtype.
    out_ref[...] = (out_ref[...].astype(jnp.float32) * scale).astype(out_ref.dtype)


def _embeddings_large_vocab(flat_ids, emb_table, scale, budget, vmem_limit):
    n_tok = flat_ids.shape[0]
    _, d_model = emb_table.shape
    dsize = jnp.dtype(emb_table.dtype).itemsize

    # The whole id array is scalar-prefetched into SMEM; 1-D SMEM allocations
    # pad to the next power of two, so cap tokens per call and chunk longer
    # sequences at the wrapper level (32768 ids = 128 KiB SMEM).
    if n_tok > _MAX_TOKENS_PER_CALL:
        outs = []
        for s in range(0, n_tok, _MAX_TOKENS_PER_CALL):
            outs.append(_embeddings_large_vocab(
                flat_ids[s:s + _MAX_TOKENS_PER_CALL], emb_table, scale,
                budget, vmem_limit))
        return jnp.concatenate(outs, axis=0)

    nsem = _GATHER_SEMS
    tok_block = min(512, _round_up(n_tok, nsem))
    # Double-buffered output tiles must fit the per-generation VMEM budget.
    while tok_block > nsem and 2 * tok_block * d_model * dsize > (budget * 3) // 4:
        tok_block = max(nsem, _round_up(tok_block // 2, nsem))

    n_pad = _round_up(n_tok, tok_block)
    if n_pad != n_tok:
        flat_ids = jnp.pad(flat_ids, (0, n_pad - n_tok))

    grid_spec = pltpu.PrefetchScalarGridSpec(
        num_scalar_prefetch=1,
        grid=(n_pad // tok_block,),
        in_specs=[pl.BlockSpec(memory_space=pl.ANY)],        # table stays in HBM
        out_specs=pl.BlockSpec((tok_block, d_model), lambda i, ids: (i, 0)),
        scratch_shapes=[pltpu.SemaphoreType.DMA((nsem,))],
    )

    out = pl.pallas_call(
        functools.partial(_dma_gather_kernel, tok_block=tok_block, nsem=nsem,
                          n_valid=n_tok, scale=scale),
        out_shape=jax.ShapeDtypeStruct((n_pad, d_model), emb_table.dtype),
        grid_spec=grid_spec,
        compiler_params=pltpu.CompilerParams(
            dimension_semantics=("parallel",),
            vmem_limit_bytes=vmem_limit,
        ),
    )(flat_ids, emb_table)

    return out[:n_tok]


# ---------------------------------------------------------------------------
# Public wrapper: Embeddings.forward(x) == Emb(x) * sqrt(d_model)
# ---------------------------------------------------------------------------
def embeddings_forward(x_ids, emb_table):
    """x_ids: (...,) int token ids; emb_table: (src_vocab, d_model).
    Returns (..., d_model) = emb_table[x_ids] * sqrt(d_model)."""
    vocab, d_model = emb_table.shape
    scale = float(math.sqrt(d_model))

    orig_shape = x_ids.shape
    flat_ids = x_ids.reshape(-1).astype(jnp.int32)
    # PyTorch's nn.Embedding errors on out-of-range ids; clamp so an OOB id can
    # never become a DMA bounds fault / garbage read on TPU.
    flat_ids = jnp.clip(flat_ids, 0, vocab - 1)

    budget, vmem_limit = _vmem_budgets()
    dsize = jnp.dtype(emb_table.dtype).itemsize
    d_pad = _round_up(d_model, 128)
    # Route to the MXU one-hot path only when the resident table leaves at
    # least half the per-TensorCore budget free (with "parallel" grid axes each
    # core holds its own table copy on v7x) and the wasted T*V*D one-hot MACs
    # stay small; otherwise use the HBM row-DMA gather path.
    use_onehot = (vocab <= _ONEHOT_VOCAB_MAX
                  and vocab * d_pad * dsize <= budget // 2)

    if use_onehot:
        out = _embeddings_small_vocab(flat_ids, emb_table, scale, budget, vmem_limit)
    else:
        out = _embeddings_large_vocab(flat_ids, emb_table, scale, budget, vmem_limit)

    return out.reshape(*orig_shape, d_model)


if __name__ == "__main__":
    # Small shapes consistent with the module's forward.
    src_vocab = 16
    d_model = 32
    batch = 2
    seq = 8

    key = jax.random.PRNGKey(0)
    k_ids, k_emb, k_ids2, k_emb2 = jax.random.split(key, 4)

    # nn.Embedding default init is N(0, 1).
    emb_table = jax.random.normal(k_emb, (src_vocab, d_model), dtype=jnp.float32)
    x = jax.random.randint(k_ids, (batch, seq), 0, src_vocab, dtype=jnp.int32)

    out = embeddings_forward(x, emb_table)
    out = jax.block_until_ready(out)

    ref = emb_table[x] * jnp.float32(math.sqrt(d_model))
    assert out.shape == (batch, seq, d_model)
    # One-hot selection (f32 table, HIGHEST precision) is exact; tolerance only
    # covers MXU pass rounding.
    assert jnp.allclose(out, ref, atol=1e-3, rtol=1e-3), "small-vocab (MXU) path mismatch"

    # Also exercise the large-vocab path (deep-ring manual DMA row gather).
    big_vocab = 16384
    big_d = 128
    emb_big = jax.random.normal(k_emb2, (big_vocab, big_d), dtype=jnp.float32)
    x_big = jax.random.randint(k_ids2, (batch, seq), 0, big_vocab, dtype=jnp.int32)
    out_big = jax.block_until_ready(embeddings_forward(x_big, emb_big))
    ref_big = emb_big[x_big] * jnp.float32(math.sqrt(big_d))
    assert out_big.shape == (batch, seq, big_d)
    assert jnp.allclose(out_big, ref_big, atol=1e-5, rtol=1e-5), "large-vocab (DMA gather) path mismatch"

    print("KERNEL_OK")
</pallas_src>

<mosaic_0001>
module attributes {stable_mosaic.version = 11 : i64} {
  func.func @_onehot_matmul_kernel(%arg0: i32, %arg1: memref<16x1xi32, #tpu.memory_space<vmem>>, %arg2: memref<16x128xf32, #tpu.memory_space<vmem>>, %arg3: memref<16x128xf32, #tpu.memory_space<vmem>>) attributes {dimension_semantics = [#tpu.dimension_semantics<parallel>], iteration_bounds = array<i64: 1>, scalar_prefetch = 0 : i64, scratch_operands = 0 : i64, tpu.core_type = #tpu.core_type<tc>, window_params = [{transform_indices = @transform_0, window_bounds = array<i64: 16, 1>}, {pipeline_mode = #tpu.pipeline_mode<synchronous>, transform_indices = @transform_1, window_bounds = array<i64: 16, 128>}, {transform_indices = @transform_2, window_bounds = array<i64: 16, 128>}]} {
    %c0 = arith.constant 0 : index
    %c0_0 = arith.constant 0 : index
    %0 = vector.load %arg1[%c0, %c0_0] : memref<16x1xi32, #tpu.memory_space<vmem>>, vector<16x1xi32>
    %1 = tpu.iota {dimensions = array<i32: 1>} : vector<16x16xi32>
    %2 = vector.broadcast %0 : vector<16x1xi32> to vector<16x16xi32>
    %3 = arith.cmpi eq, %2, %1 : vector<16x16xi32>
    %4 = arith.extui %3 : vector<16x16xi1> to vector<16x16xi32>
    %5 = arith.sitofp %4 : vector<16x16xi32> to vector<16x16xf32>
    %c0_1 = arith.constant 0 : index
    %c0_2 = arith.constant 0 : index
    %6 = vector.load %arg2[%c0_1, %c0_2] : memref<16x128xf32, #tpu.memory_space<vmem>>, vector<16x128xf32>
    %cst = arith.constant dense<0.000000e+00> : vector<16x128xf32>
    %7 = tpu.matmul %5, %6, %cst {dimension_numbers = #tpu.dot_dimension_numbers<[1], [0], [0], [1], [0, 0, 1, 1], [], []>, precision = #tpu.contract_precision<fp32>} : vector<16x16xf32>, vector<16x128xf32>, vector<16x128xf32> -> vector<16x128xf32>
    %cst_3 = arith.constant 5.65685415 : f32
    %8 = vector.broadcast %cst_3 : f32 to vector<16x128xf32>
    %9 = arith.mulf %7, %8 : vector<16x128xf32>
    %c0_4 = arith.constant 0 : index
    %c0_5 = arith.constant 0 : index
    %10 = vector.load %arg3[%c0_4, %c0_5] : memref<16x128xf32, #tpu.memory_space<vmem>>, vector<16x128xf32>
    tpu.vector_store %arg3[%c0_4, %c0_5], %9 {strides = array<i32>} : memref<16x128xf32, #tpu.memory_space<vmem>>, vector<16x128xf32>,
    return
  }
  func.func @transform_0(%arg0: i32) -> (i32, i32) {
    %c0_i32 = arith.constant 0 : i32
    %c0_i32_0 = arith.constant 0 : i32
    return %arg0, %c0_i32 : i32, i32
  }
  func.func @transform_1(%arg0: i32) -> (i32, i32) {
    %c0_i32 = arith.constant 0 : i32
    %c0_i32_0 = arith.constant 0 : i32
    %c0_i32_1 = arith.constant 0 : i32
    return %c0_i32, %c0_i32_0 : i32, i32
  }
  func.func @transform_2(%arg0: i32) -> (i32, i32) {
    %c0_i32 = arith.constant 0 : i32
    %c0_i32_0 = arith.constant 0 : i32
    return %arg0, %c0_i32 : i32, i32
  }
}

module attributes {stable_mosaic.version = 11 : i64} {
  func.func @_onehot_matmul_kernel(%arg0: i32, %arg1: memref<16x1xi32, #tpu.memory_space<vmem>>, %arg2: memref<16x128xf32, #tpu.memory_space<vmem>>, %arg3: memref<16x128xf32, #tpu.memory_space<vmem>>) attributes {dimension_semantics = [#tpu.dimension_semantics<parallel>], iteration_bounds = array<i64: 1>, scalar_prefetch = 0 : i64, scratch_operands = 0 : i64, tpu.core_type = #tpu.core_type<tc>, window_params = [{transform_indices = @transform_0, window_bounds = array<i64: 16, 1>}, {pipeline_mode = #tpu.pipeline_mode<synchronous>, transform_indices = @transform_1, window_bounds = array<i64: 16, 128>}, {transform_indices = @transform_2, window_bounds = array<i64: 16, 128>}]} {
    %c0 = arith.constant 0 : index
    %c0_0 = arith.constant 0 : index
    %0 = vector.load %arg1[%c0, %c0_0] : memref<16x1xi32, #tpu.memory_space<vmem>>, vector<16x1xi32>
    %1 = tpu.iota {dimensions = array<i32: 1>} : vector<16x16xi32>
    %2 = vector.broadcast %0 : vector<16x1xi32> to vector<16x16xi32>
    %3 = arith.cmpi eq, %2, %1 : vector<16x16xi32>
    %4 = arith.extui %3 : vector<16x16xi1> to vector<16x16xi32>
    %5 = arith.sitofp %4 : vector<16x16xi32> to vector<16x16xf32>
    %c0_1 = arith.constant 0 : index
    %c0_2 = arith.constant 0 : index
    %6 = vector.load %arg2[%c0_1, %c0_2] : memref<16x128xf32, #tpu.memory_space<vmem>>, vector<16x128xf32>
    %cst = arith.constant dense<0.000000e+00> : vector<16x128xf32>
    %7 = tpu.matmul %5, %6, %cst {dimension_numbers = #tpu.dot_dimension_numbers<[1], [0], [0], [1], [0, 0, 1, 1], [], []>, precision = #tpu.contract_precision<fp32>} : vector<16x16xf32>, vector<16x128xf32>, vector<16x128xf32> -> vector<16x128xf32>
    %cst_3 = arith.constant 5.65685415 : f32
    %8 = vector.broadcast %cst_3 : f32 to vector<16x128xf32>
    %9 = arith.mulf %7, %8 : vector<16x128xf32>
    %c0_4 = arith.constant 0 : index
    %c0_5 = arith.constant 0 : index
    %10 = vector.load %arg3[%c0_4, %c0_5] : memref<16x128xf32, #tpu.memory_space<vmem>>, vector<16x128xf32>
    tpu.vector_store %arg3[%c0_4, %c0_5], %9 {strides = array<i32>} : memref<16x128xf32, #tpu.memory_space<vmem>>, vector<16x128xf32>,
    return
  }
  func.func @transform_0(%arg0: i32) -> (i32, i32) {
    %c0_i32 = arith.constant 0 : i32
    %c0_i32_0 = arith.constant 0 : i32
    return %arg0, %c0_i32 : i32, i32
  }
  func.func @transform_1(%arg0: i32) -> (i32, i32) {
    %c0_i32 = arith.constant 0 : i32
    %c0_i32_0 = arith.constant 0 : i32
    %c0_i32_1 = arith.constant 0 : i32
    return %c0_i32, %c0_i32_0 : i32, i32
  }
  func.func @transform_2(%arg0: i32) -> (i32, i32) {
    %c0_i32 = arith.constant 0 : i32
    %c0_i32_0 = arith.constant 0 : i32
    return %arg0, %c0_i32 : i32, i32
  }
}

</mosaic_0001>

<bundles_post_ra>
// kernel: tpu_custom_call.1
= control target key start
LH: loop header
LB: loop body
LE: loop exit
PB: predicated region body
PF: predicated region fallthrough
CT: control target
= control target key end

     0   :  { %v293_v2 = vmov 0   ;;  %s336_s0 = inlined_call_operand.vmem [shape: s32[16,1], index: 0, kind: input, shape index: {}]   ;;  %s337_s1 = inlined_call_operand.vmem [shape: f32[16,128], index: 1, kind: input, shape index: {}]   ;;  %s338_s2 = inlined_call_operand.hbm [shape: f32[16,128], index: 2, kind: output, shape index: {}]  }
   0x1   :  { %v13_v0 = vld [vmem:[%s336_s0 + $0x8] sm:$0xff]  ;;  %266 = vset.pattern.permute.xlu0 %v293_v2 }
   0x2   :  { %v29_v1 = vld [vmem:[%s337_s1 + $0x8] sm:$0xff] }
   0x3   :  { %v51_v3 = vand.u32 4294901760, %v29_v1 }
   0x4   :  { %7 = vsyncpa [#allocation3], 0  ;;  %20 = vperm.xlu0 %266, %v13_v0   ;;  %v12_v6 = vld [vmem:[%s336_s0] sm:$0xff]  ;;  %v14_v15 = vlaneseq  ;;  %vm30_vm0 = vcmask 130048   ;;  %v294_v18 = vmov 0.0   ;;  %s295_s0 = smov [#allocation2]  }
   0x5   :  { %v87_v4 = vsub.f32 %v29_v1, %v51_v3  ;;  %257 = vmatpush.msra.mxu2 %v51_v3  ;;  %52 = vmatpush.msra.mxu0 %v51_v3  ;;  %v28_v9 = vld [vmem:[%s337_s1] sm:$0xff]  ;;  %s235_s1 = sshll.u32 %s295_s0, 4  ;;  %s237_s19 = sshll.u32 %s338_s2, 4  ;;  %s236_s1 = int_to_ptr.vmem [resolvable:$true] %s235_s1  ;;  %s238_s19 = int_to_ptr.hbm [resolvable:$true] %s237_s19 }
   0x6   :  { %v53_v10 = vand.u32 4294901760, %v28_v9  ;;  %v15_v16 = vand.u32 127, %v14_v15  ;;  %s296_s20 = smov 128   ;;  %s297_s21 = smov 8  }
   0x7   :  { %v88_v5 = vand.u32 4294901760, %v87_v4 }
   0x8   :  { %v93_v11 = vsub.f32 %v28_v9, %v53_v10  ;;  %258 = vmatpush.msra.mxu2 %v53_v10  ;;  %54 = vmatpush.msra.mxu0 %v53_v10 }
   0x9   :  { %v89_v7 = vsub.f32 %v87_v4, %v88_v5 }
   0xa   :  { %123 = vmatpush.msrb.mxu2 %v87_v4  ;;  %186 = vmatpush.msrb.mxu0 %v88_v5  ;;  %v94_v12 = vand.u32 4294901760, %v93_v11 }
   0xb   :  { %v90_v8 = vand.u32 4294901760, %v89_v7 }
   0xc   :  { %17 = vperm.xlu0 %266, %v12_v6   ;;  %126 = vmatpush.msrb.mxu2 %v93_v11  ;;  %v95_v13 = vsub.f32 %v93_v11, %v94_v12 }
   0xd   :  { %259 = vmatpush.msra.mxu3 %v90_v8  ;;  %91 = vmatpush.msra.mxu1 %v90_v8 }
   0xe   :  { %190 = vmatpush.msrb.mxu0 %v94_v12  ;;  %v96_v14 = vand.u32 4294901760, %v95_v13 }
  0x10   :  { %260 = vmatpush.msra.mxu3 %v96_v14  ;;  %97 = vmatpush.msra.mxu1 %v96_v14 }
  0x12   :  { %153 = vmatpush.msrb.mxu3 %v51_v3  ;;  %215 = vmatpush.msrb.mxu1 %v51_v3 }
  0x14   :  { %155 = vmatpush.msrb.mxu3 %v53_v10  ;;  %217 = vmatpush.msrb.mxu1 %v53_v10 }
  0x76   :  { %v21_v17 = vpop.permute.xlu0 %20 }
  0x77   :  { %vm23_vm1 = vcmp.eq.s32.totalorder %v21_v17, %v15_v16 }
  0x78   :  { %v250_v19 = vsel %vm23_vm1, 1.0, %v294_v18 }
  0x79   :  { %v35_v20 = vsel %vm30_vm0, %v250_v19, 0  ;;  %252 = vmatmul.msk.f32.vlgmr.msra.gmra.mxu3 %vm30_vm0, %v250_v19 }
  0x7a   :  { %v64_v21 = vsub.f32 %v35_v20, %v35_v20 }
  0x7c   :  { %v65_v22 = vand.u32 4294901760, %v64_v21 }
  0x7e   :  { %v18_v23 = vpop.permute.xlu0 %17  ;;  %v66_v24 = vsub.f32 %v64_v21, %v65_v22 }
  0x7f   :  { %vm22_vm2 = vcmp.eq.s32.totalorder %v18_v23, %v15_v16 }
  0x80   :  { %v249_v25 = vsel %vm22_vm2, 1.0, %v294_v18  ;;  %v67_v26 = vand.u32 4294901760, %v66_v24 }
  0x81   :  { %v32_v27 = vsel %vm30_vm0, %v249_v25, 0  ;;  %251 = vmatmul.msk.f32.vlgmr.msra.gmra.mxu1 %vm30_vm0, %v249_v25 }
  0x82   :  { %v56_v28 = vsub.f32 %v32_v27, %v32_v27  ;;  %68 = vmatmul.f32.vlgmr.msra.gmra.mxu2 %v67_v26 }
  0x84   :  { %v57_v29 = vand.u32 4294901760, %v56_v28 }
  0x86   :  { %159 = vmatmul.f32.vlgmr.msrb.gmra.mxu3 %v57_v29  ;;  %v58_v30 = vsub.f32 %v56_v28, %v57_v29 }
  0x88   :  { %v59_v31 = vand.u32 4294901760, %v58_v30 }
  0x89   :  { %255 = vmatmul.msk.f32.vlgmr.msrb.gmra.mxu1 %vm30_vm0, %v249_v25 }
  0x8a   :  { %60 = vmatmul.f32.vlgmr.msra.gmra.mxu0 %v59_v31  ;;  %129 = vmatmul.f32.vlgmr.msrb.gmra.mxu2 %v56_v28 }
  0x8e   :  { %165 = vmatmul.f32.gmra.mxu3 %v65_v22 }
  0x91   :  { %256 = vmatmul.msk.f32.gmra.mxu1 %vm30_vm0, %v250_v19 }
  0x92   :  { %134 = vmatmul.f32.gmra.mxu2 %v64_v21  ;;  %253 = vmatmul.msk.f32.vlgmr.msrb.gmra.mxu0 %vm30_vm0, %v249_v25 }
  0x9a   :  { %254 = vmatmul.msk.f32.gmra.mxu0 %vm30_vm0, %v250_v19 }
  0xfc   :  { %v104_v32 = vpop.f32.mrf.mxu3 }
  0xfe   :  { %v100_v34 = vpop.f32.mrf.mxu1 }
 0x105   :  { %v69_v33 = vpop.f32.mrf.mxu2 }
 0x106   :  { %v220_v42 = vpop.f32.mrf.mxu1  ;;  %v105_v44 = vadd.f32 %v104_v32, %v69_v33 }
 0x107   :  { %v61_v35 = vpop.f32.mrf.mxu0 }
 0x108   :  { %v101_v36 = vadd.f32 %v100_v34, %v61_v35 }
 0x109   :  { %v160_v37 = vpop.f32.mrf.mxu3 }
 0x10d   :  { %v130_v38 = vpop.f32.mrf.mxu2 }
 0x10e   :  { %v131_v39 = vadd.f32 %v130_v38, %v101_v36  ;;  %v224_v53 = vpop.f32.mrf.mxu1 }
 0x10f   :  { %v193_v40 = vpop.f32.mrf.mxu0 }
 0x110   :  { %v161_v41 = vadd.f32 %v160_v37, %v131_v39 }
 0x111   :  { %v166_v49 = vpop.f32.mrf.mxu3 }
 0x112   :  { %v194_v43 = vadd.f32 %v193_v40, %v161_v41 }
 0x114   :  { %v221_v45 = vadd.f32 %v220_v42, %v194_v43 }
 0x115   :  { %v135_v46 = vpop.f32.mrf.mxu2 }
 0x116   :  { %v227_v47 = vmul.f32 5.656854, %v221_v45  ;;  %v136_v48 = vadd.f32 %v135_v46, %v105_v44 }
 0x117   :  { %v197_v51 = vpop.f32.mrf.mxu0 }
 0x118   :  { %229 = vst [vmem:[#allocation2] sm:$0xff] %v227_v47  ;;  %v167_v50 = vadd.f32 %v166_v49, %v136_v48 }
 0x11a   :  { %v198_v52 = vadd.f32 %v197_v51, %v167_v50 }
 0x11c   :  { %v225_v54 = vadd.f32 %v224_v53, %v198_v52 }
 0x11e   :  { %v228_v55 = vmul.f32 5.656854, %v225_v54 }
 0x120   :  { %230 = vst [vmem:[#allocation2 + $0x8] sm:$0xff] %v228_v55 }
 0x121   :  { %243 = dma.vmem_to_hbm [thread:$0]  %s236_s1, 256, %s238_s19, [#allocation3], %s296_s20, %s296_s20, %s297_s21  }
 0x122   :  { %291 = dma.done.wait [#allocation3], 256  }
 0x123   :  { %292 = vsyncadd [#allocation3], 4294967040 }
 0x124   :  { %248 = vsyncpa [#allocation3], 1 }

// kernel: tpu_custom_call.1
= control target key start
LH: loop header
LB: loop body
LE: loop exit
PB: predicated region body
PF: predicated region fallthrough
CT: control target
= control target key end

     0   :  { %v293_v2 = vmov 0   ;;  %s336_s0 = inlined_call_operand.vmem [shape: s32[16,1], index: 0, kind: input, shape index: {}]   ;;  %s337_s1 = inlined_call_operand.vmem [shape: f32[16,128], index: 1, kind: input, shape index: {}]   ;;  %s338_s2 = inlined_call_operand.hbm [shape: f32[16,128], index: 2, kind: output, shape index: {}]  }
   0x1   :  { %v13_v0 = vld [vmem:[%s336_s0 + $0x8] sm:$0xff]  ;;  %266 = vset.pattern.permute.xlu0 %v293_v2 }
   0x2   :  { %v29_v1 = vld [vmem:[%s337_s1 + $0x8] sm:$0xff] }
   0x3   :  { %v51_v3 = vand.u32 4294901760, %v29_v1 }
   0x4   :  { %7 = vsyncpa [#allocation3], 0  ;;  %20 = vperm.xlu0 %266, %v13_v0   ;;  %v12_v6 = vld [vmem:[%s336_s0] sm:$0xff]  ;;  %v14_v15 = vlaneseq  ;;  %vm30_vm0 = vcmask 130048   ;;  %v294_v18 = vmov 0.0   ;;  %s295_s0 = smov [#allocation2]  }
   0x5   :  { %v87_v4 = vsub.f32 %v29_v1, %v51_v3  ;;  %257 = vmatpush.msra.mxu2 %v51_v3  ;;  %52 = vmatpush.msra.mxu0 %v51_v3  ;;  %v28_v9 = vld [vmem:[%s337_s1] sm:$0xff]  ;;  %s235_s1 = sshll.u32 %s295_s0, 4  ;;  %s237_s19 = sshll.u32 %s338_s2, 4  ;;  %s236_s1 = int_to_ptr.vmem [resolvable:$true] %s235_s1  ;;  %s238_s19 = int_to_ptr.hbm [resolvable:$true] %s237_s19 }
   0x6   :  { %v53_v10 = vand.u32 4294901760, %v28_v9  ;;  %v15_v16 = vand.u32 127, %v14_v15  ;;  %s296_s20 = smov 128   ;;  %s297_s21 = smov 8  }
   0x7   :  { %v88_v5 = vand.u32 4294901760, %v87_v4 }
   0x8   :  { %v93_v11 = vsub.f32 %v28_v9, %v53_v10  ;;  %258 = vmatpush.msra.mxu2 %v53_v10  ;;  %54 = vmatpush.msra.mxu0 %v53_v10 }
   0x9   :  { %v89_v7 = vsub.f32 %v87_v4, %v88_v5 }
   0xa   :  { %123 = vmatpush.msrb.mxu2 %v87_v4  ;;  %186 = vmatpush.msrb.mxu0 %v88_v5  ;;  %v94_v12 = vand.u32 4294901760, %v93_v11 }
   0xb   :  { %v90_v8 = vand.u32 4294901760, %v89_v7 }
   0xc   :  { %17 = vperm.xlu0 %266, %v12_v6   ;;  %126 = vmatpush.msrb.mxu2 %v93_v11  ;;  %v95_v13 = vsub.f32 %v93_v11, %v94_v12 }
   0xd   :  { %259 = vmatpush.msra.mxu3 %v90_v8  ;;  %91 = vmatpush.msra.mxu1 %v90_v8 }
   0xe   :  { %190 = vmatpush.msrb.mxu0 %v94_v12  ;;  %v96_v14 = vand.u32 4294901760, %v95_v13 }
  0x10   :  { %260 = vmatpush.msra.mxu3 %v96_v14  ;;  %97 = vmatpush.msra.mxu1 %v96_v14 }
  0x12   :  { %153 = vmatpush.msrb.mxu3 %v51_v3  ;;  %215 = vmatpush.msrb.mxu1 %v51_v3 }
  0x14   :  { %155 = vmatpush.msrb.mxu3 %v53_v10  ;;  %217 = vmatpush.msrb.mxu1 %v53_v10 }
  0x76   :  { %v21_v17 = vpop.permute.xlu0 %20 }
  0x77   :  { %vm23_vm1 = vcmp.eq.s32.totalorder %v21_v17, %v15_v16 }
  0x78   :  { %v250_v19 = vsel %vm23_vm1, 1.0, %v294_v18 }
  0x79   :  { %v35_v20 = vsel %vm30_vm0, %v250_v19, 0  ;;  %252 = vmatmul.msk.f32.vlgmr.msra.gmra.mxu3 %vm30_vm0, %v250_v19 }
  0x7a   :  { %v64_v21 = vsub.f32 %v35_v20, %v35_v20 }
  0x7c   :  { %v65_v22 = vand.u32 4294901760, %v64_v21 }
  0x7e   :  { %v18_v23 = vpop.permute.xlu0 %17  ;;  %v66_v24 = vsub.f32 %v64_v21, %v65_v22 }
  0x7f   :  { %vm22_vm2 = vcmp.eq.s32.totalorder %v18_v23, %v15_v16 }
  0x80   :  { %v249_v25 = vsel %vm22_vm2, 1.0, %v294_v18  ;;  %v67_v26 = vand.u32 4294901760, %v66_v24 }
  0x81   :  { %v32_v27 = vsel %vm30_vm0, %v249_v25, 0  ;;  %251 = vmatmul.msk.f32.vlgmr.msra.gmra.mxu1 %vm30_vm0, %v249_v25 }
  0x82   :  { %v56_v28 = vsub.f32 %v32_v27, %v32_v27  ;;  %68 = vmatmul.f32.vlgmr.msra.gmra.mxu2 %v67_v26 }
  0x84   :  { %v57_v29 = vand.u32 4294901760, %v56_v28 }
  0x86   :  { %159 = vmatmul.f32.vlgmr.msrb.gmra.mxu3 %v57_v29  ;;  %v58_v30 = vsub.f32 %v56_v28, %v57_v29 }
  0x88   :  { %v59_v31 = vand.u32 4294901760, %v58_v30 }
  0x89   :  { %255 = vmatmul.msk.f32.vlgmr.msrb.gmra.mxu1 %vm30_vm0, %v249_v25 }
  0x8a   :  { %60 = vmatmul.f32.vlgmr.msra.gmra.mxu0 %v59_v31  ;;  %129 = vmatmul.f32.vlgmr.msrb.gmra.mxu2 %v56_v28 }
  0x8e   :  { %165 = vmatmul.f32.gmra.mxu3 %v65_v22 }
  0x91   :  { %256 = vmatmul.msk.f32.gmra.mxu1 %vm30_vm0, %v250_v19 }
  0x92   :  { %134 = vmatmul.f32.gmra.mxu2 %v64_v21  ;;  %253 = vmatmul.msk.f32.vlgmr.msrb.gmra.mxu0 %vm30_vm0, %v249_v25 }
  0x9a   :  { %254 = vmatmul.msk.f32.gmra.mxu0 %vm30_vm0, %v250_v19 }
  0xfc   :  { %v104_v32 = vpop.f32.mrf.mxu3 }
  0xfe   :  { %v100_v34 = vpop.f32.mrf.mxu1 }
 0x105   :  { %v69_v33 = vpop.f32.mrf.mxu2 }
 0x106   :  { %v220_v42 = vpop.f32.mrf.mxu1  ;;  %v105_v44 = vadd.f32 %v104_v32, %v69_v33 }
 0x107   :  { %v61_v35 = vpop.f32.mrf.mxu0 }
 0x108   :  { %v101_v36 = vadd.f32 %v100_v34, %v61_v35 }
 0x109   :  { %v160_v37 = vpop.f32.mrf.mxu3 }
 0x10d   :  { %v130_v38 = vpop.f32.mrf.mxu2 }
 0x10e   :  { %v131_v39 = vadd.f32 %v130_v38, %v101_v36  ;;  %v224_v53 = vpop.f32.mrf.mxu1 }
 0x10f   :  { %v193_v40 = vpop.f32.mrf.mxu0 }
 0x110   :  { %v161_v41 = vadd.f32 %v160_v37, %v131_v39 }
 0x111   :  { %v166_v49 = vpop.f32.mrf.mxu3 }
 0x112   :  { %v194_v43 = vadd.f32 %v193_v40, %v161_v41 }
 0x114   :  { %v221_v45 = vadd.f32 %v220_v42, %v194_v43 }
 0x115   :  { %v135_v46 = vpop.f32.mrf.mxu2 }
 0x116   :  { %v227_v47 = vmul.f32 5.656854, %v221_v45  ;;  %v136_v48 = vadd.f32 %v135_v46, %v105_v44 }
 0x117   :  { %v197_v51 = vpop.f32.mrf.mxu0 }
 0x118   :  { %229 = vst [vmem:[#allocation2] sm:$0xff] %v227_v47  ;;  %v167_v50 = vadd.f32 %v166_v49, %v136_v48 }
 0x11a   :  { %v198_v52 = vadd.f32 %v197_v51, %v167_v50 }
 0x11c   :  { %v225_v54 = vadd.f32 %v224_v53, %v198_v52 }
 0x11e   :  { %v228_v55 = vmul.f32 5.656854, %v225_v54 }
 0x120   :  { %230 = vst [vmem:[#allocation2 + $0x8] sm:$0xff] %v228_v55 }
 0x121   :  { %243 = dma.vmem_to_hbm [thread:$0]  %s236_s1, 256, %s238_s19, [#allocation3], %s296_s20, %s296_s20, %s297_s21  }
 0x122   :  { %291 = dma.done.wait [#allocation3], 256  }
 0x123   :  { %292 = vsyncadd [#allocation3], 4294967040 }
 0x124   :  { %248 = vsyncpa [#allocation3], 1 }

</bundles_post_ra>
